<compile_context>
chip_gen: v5e
topology: v5e:2x2
jax: 0.10.0
libtpu: 0.0.40
codegen_flags: <defaults>
</compile_context>

<pallas_src>
import math

import jax
import jax.numpy as jnp
from jax.experimental import pallas as pl
from jax.experimental.pallas import tpu as pltpu


def _vmem_capacity_bytes():
    try:
        return int(pltpu.get_tpu_info().vmem_capacity_bytes)
    except Exception:
        return 64 * 1024 * 1024          # conservative: v7x per-TensorCore VMEM


def _pick_row_tile(Hp, Wp, Cin, Cout, vmem_cap):
    """Pooled rows per grid step, derived from a VMEM byte budget."""
    # Per pooled output row: input row pair (Cin * 4*Wp f32) + output row
    # (Cout * Wp f32), both double-buffered by the pipeline.
    bytes_per_row = 4 * 2 * (Cin * 4 * Wp + Cout * Wp)
    budget = max(4 << 20, int(0.35 * vmem_cap))
    cap_rows = max(1, budget // max(1, bytes_per_row))
    cap_rows = min(cap_rows, 128)        # bound in-kernel unrolling
    if Hp <= cap_rows:
        return Hp
    # Partial row blocks must keep block shapes legal: the input block's last
    # dim is TH*4*Wp and the output block's last dim is TH*Wp; both must be
    # multiples of 128 (or cover the full axis, handled above).
    step = 128 // math.gcd(Wp, 128)      # smallest TH with TH*Wp % 128 == 0
    th = (cap_rows // step) * step
    if th == 0:
        th = step
    return min(th, Hp)


def transition_block_forward(x_nchw, w_oihw, bias):
    """NCHW f32 -> MaxPool2d(2,2) -> Conv2d(1x1) + bias -> ReLU -> NCHW f32."""
    N, Cin, H, W = x_nchw.shape
    Cout = w_oihw.shape[0]
    Hp, Wp = H // 2, W // 2              # torch MaxPool2d(2,2): floor, no padding
    He, We = 2 * Hp, 2 * Wp

    x = x_nchw.astype(jnp.float32)
    if (He, We) != (H, W):               # crop odd trailing row/col (no-op if even)
        x = x[:, :, :He, :We]
    # Free, contiguity-preserving view: flat spatial per channel.
    x_flat = x.reshape(N, Cin, He * We)

    w2 = w_oihw.reshape(Cout, Cin).astype(jnp.float32)          # (Cout, Cin)
    b2 = bias.astype(jnp.float32).reshape(Cout, 1)               # (Cout, 1)

    vmem_cap = _vmem_capacity_bytes()
    TH = _pick_row_tile(Hp, Wp, Cin, Cout, vmem_cap)
    n_rb = pl.cdiv(Hp, TH)

    in_blk = Cin * TH * 4 * Wp * 4
    out_blk = Cout * TH * Wp * 4
    scratch_b = max(Cin, 8) * max(TH * Wp, 128) * 4
    need = 2 * (in_blk + out_blk) + scratch_b + (Cout * Cin + Cout) * 4 + (4 << 20)
    vmem_limit = int(min(int(0.9 * vmem_cap), max(32 << 20, need)))

    def kernel(x_ref, w_ref, b_ref, o_ref, pooled_ref):
        # x_ref:      (1, Cin, TH*2*We)  TH input-row pairs, flat spatial / channel
        # w_ref:      (Cout, Cin)        1x1 conv weight
        # b_ref:      (Cout, 1)          bias
        # o_ref:      (1, Cout, TH*Wp)   output tile (flat pooled spatial)
        # pooled_ref: (Cin, TH*Wp)       VMEM scratch: pooled activations
        # Even/odd column selection matrix S: (We, 2*Wp)
        #   S[i, j]      = 1 iff i == 2j      (even columns)
        #   S[i, Wp + j] = 1 iff i == 2j + 1  (odd columns)
        ii = jax.lax.broadcasted_iota(jnp.int32, (We, 2 * Wp), 0)
        jj = jax.lax.broadcasted_iota(jnp.int32, (We, 2 * Wp), 1)
        tgt = jnp.where(jj < Wp, 2 * jj, 2 * (jj - Wp) + 1)
        S = (ii == tgt).astype(jnp.float32)

        # ---- MaxPool2d(2,2): one pooled row at a time, contiguous slices only ----
        for t in range(TH):
            xt = x_ref[0, :, 2 * t * We:(2 * t + 2) * We]        # (Cin, 2*We) row pair
            rows = jnp.maximum(xt[:, :We], xt[:, We:])           # vertical max (Cin, We)
            eo = jnp.dot(rows, S, preferred_element_type=jnp.float32)  # (Cin, 2*Wp)
            pooled_ref[:, t * Wp:(t + 1) * Wp] = jnp.maximum(eo[:, :Wp], eo[:, Wp:])

        # ---- 1x1 conv + bias + ReLU: one MXU matmul over all pooled pixels ----
        y = jnp.dot(w_ref[...], pooled_ref[...],
                    preferred_element_type=jnp.float32)          # (Cout, TH*Wp)
        y = jnp.maximum(y + b_ref[...], 0.0)
        o_ref[0] = y.astype(o_ref.dtype)

    out_flat = pl.pallas_call(
        kernel,
        out_shape=jax.ShapeDtypeStruct((N, Cout, Hp * Wp), jnp.float32),
        grid=(N, n_rb),
        in_specs=[
            pl.BlockSpec((1, Cin, TH * 2 * We), lambda n, r: (n, 0, r)),
            pl.BlockSpec((Cout, Cin), lambda n, r: (0, 0),
                         pipeline_mode=pl.Buffered(1)),
            pl.BlockSpec((Cout, 1), lambda n, r: (0, 0),
                         pipeline_mode=pl.Buffered(1)),
        ],
        out_specs=pl.BlockSpec((1, Cout, TH * Wp), lambda n, r: (n, 0, r)),
        scratch_shapes=[pltpu.VMEM((Cin, TH * Wp), jnp.float32)],
        compiler_params=pltpu.CompilerParams(
            dimension_semantics=("parallel", "parallel"),
            vmem_limit_bytes=vmem_limit,
        ),
    )(x_flat, w2, b2)

    return out_flat.reshape(N, Cout, Hp, Wp)   # free view back to NCHW


def reference(x_nchw, w_oihw, bias):
    pooled = jax.lax.reduce_window(
        x_nchw, -jnp.inf, jax.lax.max,
        window_dimensions=(1, 1, 2, 2),
        window_strides=(1, 1, 2, 2),
        padding='VALID')
    y = jax.lax.conv_general_dilated(
        pooled, w_oihw, window_strides=(1, 1), padding='VALID',
        dimension_numbers=('NCHW', 'OIHW', 'NCHW'))
    y = y + bias[None, :, None, None]
    return jnp.maximum(y, 0.0)


if __name__ == "__main__":
    N, Cin, Cout, H, W = 2, 4, 8, 16, 16

    key = jax.random.PRNGKey(0)
    kx, kw, kb = jax.random.split(key, 3)

    x = jax.random.normal(kx, (N, Cin, H, W), dtype=jnp.float32)

    # torch Conv2d(Cin, Cout, 1) default init: U(-1/sqrt(fan_in), 1/sqrt(fan_in))
    fan_in = Cin * 1 * 1
    bound = 1.0 / (fan_in ** 0.5)
    w = jax.random.uniform(kw, (Cout, Cin, 1, 1), jnp.float32, -bound, bound)
    b = jax.random.uniform(kb, (Cout,), jnp.float32, -bound, bound)

    out = transition_block_forward(x, w, b)
    out = jax.block_until_ready(out)

    ref = reference(x, w, b)
    assert out.shape == (N, Cout, H // 2, W // 2), out.shape
    assert jnp.allclose(out, ref, atol=1e-5, rtol=1e-5), \
        f"max abs err = {jnp.max(jnp.abs(out - ref))}"

    print("KERNEL_OK")
</pallas_src>

<mosaic_0001>
module attributes {stable_mosaic.version = 11 : i64} {
  func.func @kernel(%arg0: i32, %arg1: i32, %arg2: memref<1x4x256xf32, #tpu.memory_space<vmem>>, %arg3: memref<8x4xf32, #tpu.memory_space<vmem>>, %arg4: memref<8x1xf32, #tpu.memory_space<vmem>>, %arg5: memref<1x8x64xf32, #tpu.memory_space<vmem>>, %arg6: memref<4x64xf32, #tpu.memory_space<vmem>>) attributes {dimension_semantics = [#tpu.dimension_semantics<parallel>, #tpu.dimension_semantics<parallel>], iteration_bounds = array<i64: 2, 1>, scalar_prefetch = 0 : i64, scratch_operands = 1 : i64, tpu.core_type = #tpu.core_type<tc>, window_params = [{transform_indices = @transform_0, window_bounds = array<i64: 1, 4, 256>}, {pipeline_mode = #tpu.pipeline_mode<synchronous>, transform_indices = @transform_1, window_bounds = array<i64: 8, 4>}, {pipeline_mode = #tpu.pipeline_mode<synchronous>, transform_indices = @transform_2, window_bounds = array<i64: 8, 1>}, {transform_indices = @transform_3, window_bounds = array<i64: 1, 8, 64>}]} {
    %0 = tpu.iota {dimensions = array<i32: 0>} : vector<16x16xi32>
    %1 = tpu.iota {dimensions = array<i32: 1>} : vector<16x16xi32>
    %c8_i32 = arith.constant 8 : i32
    %2 = vector.broadcast %c8_i32 : i32 to vector<16x16xi32>
    %3 = arith.cmpi slt, %1, %2 : vector<16x16xi32>
    %c2_i32 = arith.constant 2 : i32
    %4 = vector.broadcast %c2_i32 : i32 to vector<16x16xi32>
    %5 = arith.muli %4, %1 : vector<16x16xi32>
    %c8_i32_0 = arith.constant 8 : i32
    %6 = vector.broadcast %c8_i32_0 : i32 to vector<16x16xi32>
    %7 = arith.subi %1, %6 : vector<16x16xi32>
    %c2_i32_1 = arith.constant 2 : i32
    %8 = vector.broadcast %c2_i32_1 : i32 to vector<16x16xi32>
    %9 = arith.muli %8, %7 : vector<16x16xi32>
    %c1_i32 = arith.constant 1 : i32
    %10 = vector.broadcast %c1_i32 : i32 to vector<16x16xi32>
    %11 = arith.addi %9, %10 : vector<16x16xi32>
    %12 = arith.select %3, %5, %11 : vector<16x16xi1>, vector<16x16xi32>
    %13 = arith.cmpi eq, %0, %12 : vector<16x16xi32>
    %14 = arith.extui %13 : vector<16x16xi1> to vector<16x16xi32>
    %15 = arith.sitofp %14 : vector<16x16xi32> to vector<16x16xf32>
    %c0 = arith.constant 0 : index
    %c0_2 = arith.constant 0 : index
    %c0_3 = arith.constant 0 : index
    %16 = vector.load %arg2[%c0, %c0_2, %c0_3] : memref<1x4x256xf32, #tpu.memory_space<vmem>>, vector<1x4x32xf32>
    %17 = vector.shape_cast %16 : vector<1x4x32xf32> to vector<4x32xf32>
    %18 = vector.extract_strided_slice %17 {offsets = [0, 0], sizes = [4, 16], strides = [1, 1]} : vector<4x32xf32> to vector<4x16xf32>
    %19 = vector.extract_strided_slice %17 {offsets = [0, 16], sizes = [4, 16], strides = [1, 1]} : vector<4x32xf32> to vector<4x16xf32>
    %20 = arith.maximumf %18, %19 : vector<4x16xf32>
    %cst = arith.constant dense<0.000000e+00> : vector<4x16xf32>
    %21 = tpu.matmul %20, %15, %cst {dimension_numbers = #tpu.dot_dimension_numbers<[1], [0], [0], [1], [0, 0, 1, 1], [], []>} : vector<4x16xf32>, vector<16x16xf32>, vector<4x16xf32> -> vector<4x16xf32>
    %22 = vector.extract_strided_slice %21 {offsets = [0, 0], sizes = [4, 8], strides = [1, 1]} : vector<4x16xf32> to vector<4x8xf32>
    %23 = vector.extract_strided_slice %21 {offsets = [0, 8], sizes = [4, 8], strides = [1, 1]} : vector<4x16xf32> to vector<4x8xf32>
    %24 = arith.maximumf %22, %23 : vector<4x8xf32>
    %c0_4 = arith.constant 0 : index
    %c0_5 = arith.constant 0 : index
    %25 = vector.load %arg6[%c0_4, %c0_5] : memref<4x64xf32, #tpu.memory_space<vmem>>, vector<4x8xf32>
    tpu.vector_store %arg6[%c0_4, %c0_5], %24 {strides = array<i32>} : memref<4x64xf32, #tpu.memory_space<vmem>>, vector<4x8xf32>,
    %c0_6 = arith.constant 0 : index
    %c0_7 = arith.constant 0 : index
    %c32 = arith.constant 32 : index
    %26 = vector.load %arg2[%c0_6, %c0_7, %c32] : memref<1x4x256xf32, #tpu.memory_space<vmem>>, vector<1x4x32xf32>
    %27 = vector.shape_cast %26 : vector<1x4x32xf32> to vector<4x32xf32>
    %28 = vector.extract_strided_slice %27 {offsets = [0, 0], sizes = [4, 16], strides = [1, 1]} : vector<4x32xf32> to vector<4x16xf32>
    %29 = vector.extract_strided_slice %27 {offsets = [0, 16], sizes = [4, 16], strides = [1, 1]} : vector<4x32xf32> to vector<4x16xf32>
    %30 = arith.maximumf %28, %29 : vector<4x16xf32>
    %cst_8 = arith.constant dense<0.000000e+00> : vector<4x16xf32>
    %31 = tpu.matmul %30, %15, %cst_8 {dimension_numbers = #tpu.dot_dimension_numbers<[1], [0], [0], [1], [0, 0, 1, 1], [], []>} : vector<4x16xf32>, vector<16x16xf32>, vector<4x16xf32> -> vector<4x16xf32>
    %32 = vector.extract_strided_slice %31 {offsets = [0, 0], sizes = [4, 8], strides = [1, 1]} : vector<4x16xf32> to vector<4x8xf32>
    %33 = vector.extract_strided_slice %31 {offsets = [0, 8], sizes = [4, 8], strides = [1, 1]} : vector<4x16xf32> to vector<4x8xf32>
    %34 = arith.maximumf %32, %33 : vector<4x8xf32>
    %c0_9 = arith.constant 0 : index
    %c8 = arith.constant 8 : index
    %35 = vector.load %arg6[%c0_9, %c8] : memref<4x64xf32, #tpu.memory_space<vmem>>, vector<4x8xf32>
    tpu.vector_store %arg6[%c0_9, %c8], %34 {strides = array<i32>} : memref<4x64xf32, #tpu.memory_space<vmem>>, vector<4x8xf32>,
    %c0_10 = arith.constant 0 : index
    %c0_11 = arith.constant 0 : index
    %c64 = arith.constant 64 : index
    %36 = vector.load %arg2[%c0_10, %c0_11, %c64] : memref<1x4x256xf32, #tpu.memory_space<vmem>>, vector<1x4x32xf32>
    %37 = vector.shape_cast %36 : vector<1x4x32xf32> to vector<4x32xf32>
    %38 = vector.extract_strided_slice %37 {offsets = [0, 0], sizes = [4, 16], strides = [1, 1]} : vector<4x32xf32> to vector<4x16xf32>
    %39 = vector.extract_strided_slice %37 {offsets = [0, 16], sizes = [4, 16], strides = [1, 1]} : vector<4x32xf32> to vector<4x16xf32>
    %40 = arith.maximumf %38, %39 : vector<4x16xf32>
    %cst_12 = arith.constant dense<0.000000e+00> : vector<4x16xf32>
    %41 = tpu.matmul %40, %15, %cst_12 {dimension_numbers = #tpu.dot_dimension_numbers<[1], [0], [0], [1], [0, 0, 1, 1], [], []>} : vector<4x16xf32>, vector<16x16xf32>, vector<4x16xf32> -> vector<4x16xf32>
    %42 = vector.extract_strided_slice %41 {offsets = [0, 0], sizes = [4, 8], strides = [1, 1]} : vector<4x16xf32> to vector<4x8xf32>
    %43 = vector.extract_strided_slice %41 {offsets = [0, 8], sizes = [4, 8], strides = [1, 1]} : vector<4x16xf32> to vector<4x8xf32>
    %44 = arith.maximumf %42, %43 : vector<4x8xf32>
    %c0_13 = arith.constant 0 : index
    %c16 = arith.constant 16 : index
    %45 = vector.load %arg6[%c0_13, %c16] : memref<4x64xf32, #tpu.memory_space<vmem>>, vector<4x8xf32>
    tpu.vector_store %arg6[%c0_13, %c16], %44 {strides = array<i32>} : memref<4x64xf32, #tpu.memory_space<vmem>>, vector<4x8xf32>,
    %c0_14 = arith.constant 0 : index
    %c0_15 = arith.constant 0 : index
    %c96 = arith.constant 96 : index
    %46 = vector.load %arg2[%c0_14, %c0_15, %c96] : memref<1x4x256xf32, #tpu.memory_space<vmem>>, vector<1x4x32xf32>
    %47 = vector.shape_cast %46 : vector<1x4x32xf32> to vector<4x32xf32>
    %48 = vector.extract_strided_slice %47 {offsets = [0, 0], sizes = [4, 16], strides = [1, 1]} : vector<4x32xf32> to vector<4x16xf32>
    %49 = vector.extract_strided_slice %47 {offsets = [0, 16], sizes = [4, 16], strides = [1, 1]} : vector<4x32xf32> to vector<4x16xf32>
    %50 = arith.maximumf %48, %49 : vector<4x16xf32>
    %cst_16 = arith.constant dense<0.000000e+00> : vector<4x16xf32>
    %51 = tpu.matmul %50, %15, %cst_16 {dimension_numbers = #tpu.dot_dimension_numbers<[1], [0], [0], [1], [0, 0, 1, 1], [], []>} : vector<4x16xf32>, vector<16x16xf32>, vector<4x16xf32> -> vector<4x16xf32>
    %52 = vector.extract_strided_slice %51 {offsets = [0, 0], sizes = [4, 8], strides = [1, 1]} : vector<4x16xf32> to vector<4x8xf32>
    %53 = vector.extract_strided_slice %51 {offsets = [0, 8], sizes = [4, 8], strides = [1, 1]} : vector<4x16xf32> to vector<4x8xf32>
    %54 = arith.maximumf %52, %53 : vector<4x8xf32>
    %c0_17 = arith.constant 0 : index
    %c24 = arith.constant 24 : index
    %55 = vector.load %arg6[%c0_17, %c24] : memref<4x64xf32, #tpu.memory_space<vmem>>, vector<4x8xf32>
    tpu.vector_store %arg6[%c0_17, %c24], %54 {strides = array<i32>} : memref<4x64xf32, #tpu.memory_space<vmem>>, vector<4x8xf32>,
    %c0_18 = arith.constant 0 : index
    %c0_19 = arith.constant 0 : index
    %c128 = arith.constant 128 : index
    %56 = vector.load %arg2[%c0_18, %c0_19, %c128] : memref<1x4x256xf32, #tpu.memory_space<vmem>>, vector<1x4x32xf32>
    %57 = vector.shape_cast %56 : vector<1x4x32xf32> to vector<4x32xf32>
    %58 = vector.extract_strided_slice %57 {offsets = [0, 0], sizes = [4, 16], strides = [1, 1]} : vector<4x32xf32> to vector<4x16xf32>
    %59 = vector.extract_strided_slice %57 {offsets = [0, 16], sizes = [4, 16], strides = [1, 1]} : vector<4x32xf32> to vector<4x16xf32>
    %60 = arith.maximumf %58, %59 : vector<4x16xf32>
    %cst_20 = arith.constant dense<0.000000e+00> : vector<4x16xf32>
    %61 = tpu.matmul %60, %15, %cst_20 {dimension_numbers = #tpu.dot_dimension_numbers<[1], [0], [0], [1], [0, 0, 1, 1], [], []>} : vector<4x16xf32>, vector<16x16xf32>, vector<4x16xf32> -> vector<4x16xf32>
    %62 = vector.extract_strided_slice %61 {offsets = [0, 0], sizes = [4, 8], strides = [1, 1]} : vector<4x16xf32> to vector<4x8xf32>
    %63 = vector.extract_strided_slice %61 {offsets = [0, 8], sizes = [4, 8], strides = [1, 1]} : vector<4x16xf32> to vector<4x8xf32>
    %64 = arith.maximumf %62, %63 : vector<4x8xf32>
    %c0_21 = arith.constant 0 : index
    %c32_22 = arith.constant 32 : index
    %65 = vector.load %arg6[%c0_21, %c32_22] : memref<4x64xf32, #tpu.memory_space<vmem>>, vector<4x8xf32>
    tpu.vector_store %arg6[%c0_21, %c32_22], %64 {strides = array<i32>} : memref<4x64xf32, #tpu.memory_space<vmem>>, vector<4x8xf32>,
    %c0_23 = arith.constant 0 : index
    %c0_24 = arith.constant 0 : index
    %c160 = arith.constant 160 : index
    %66 = vector.load %arg2[%c0_23, %c0_24, %c160] : memref<1x4x256xf32, #tpu.memory_space<vmem>>, vector<1x4x32xf32>
    %67 = vector.shape_cast %66 : vector<1x4x32xf32> to vector<4x32xf32>
    %68 = vector.extract_strided_slice %67 {offsets = [0, 0], sizes = [4, 16], strides = [1, 1]} : vector<4x32xf32> to vector<4x16xf32>
    %69 = vector.extract_strided_slice %67 {offsets = [0, 16], sizes = [4, 16], strides = [1, 1]} : vector<4x32xf32> to vector<4x16xf32>
    %70 = arith.maximumf %68, %69 : vector<4x16xf32>
    %cst_25 = arith.constant dense<0.000000e+00> : vector<4x16xf32>
    %71 = tpu.matmul %70, %15, %cst_25 {dimension_numbers = #tpu.dot_dimension_numbers<[1], [0], [0], [1], [0, 0, 1, 1], [], []>} : vector<4x16xf32>, vector<16x16xf32>, vector<4x16xf32> -> vector<4x16xf32>
    %72 = vector.extract_strided_slice %71 {offsets = [0, 0], sizes = [4, 8], strides = [1, 1]} : vector<4x16xf32> to vector<4x8xf32>
    %73 = vector.extract_strided_slice %71 {offsets = [0, 8], sizes = [4, 8], strides = [1, 1]} : vector<4x16xf32> to vector<4x8xf32>
    %74 = arith.maximumf %72, %73 : vector<4x8xf32>
    %c0_26 = arith.constant 0 : index
    %c40 = arith.constant 40 : index
    %75 = vector.load %arg6[%c0_26, %c40] : memref<4x64xf32, #tpu.memory_space<vmem>>, vector<4x8xf32>
    tpu.vector_store %arg6[%c0_26, %c40], %74 {strides = array<i32>} : memref<4x64xf32, #tpu.memory_space<vmem>>, vector<4x8xf32>,
    %c0_27 = arith.constant 0 : index
    %c0_28 = arith.constant 0 : index
    %c192 = arith.constant 192 : index
    %76 = vector.load %arg2[%c0_27, %c0_28, %c192] : memref<1x4x256xf32, #tpu.memory_space<vmem>>, vector<1x4x32xf32>
    %77 = vector.shape_cast %76 : vector<1x4x32xf32> to vector<4x32xf32>
    %78 = vector.extract_strided_slice %77 {offsets = [0, 0], sizes = [4, 16], strides = [1, 1]} : vector<4x32xf32> to vector<4x16xf32>
    %79 = vector.extract_strided_slice %77 {offsets = [0, 16], sizes = [4, 16], strides = [1, 1]} : vector<4x32xf32> to vector<4x16xf32>
    %80 = arith.maximumf %78, %79 : vector<4x16xf32>
    %cst_29 = arith.constant dense<0.000000e+00> : vector<4x16xf32>
    %81 = tpu.matmul %80, %15, %cst_29 {dimension_numbers = #tpu.dot_dimension_numbers<[1], [0], [0], [1], [0, 0, 1, 1], [], []>} : vector<4x16xf32>, vector<16x16xf32>, vector<4x16xf32> -> vector<4x16xf32>
    %82 = vector.extract_strided_slice %81 {offsets = [0, 0], sizes = [4, 8], strides = [1, 1]} : vector<4x16xf32> to vector<4x8xf32>
    %83 = vector.extract_strided_slice %81 {offsets = [0, 8], sizes = [4, 8], strides = [1, 1]} : vector<4x16xf32> to vector<4x8xf32>
    %84 = arith.maximumf %82, %83 : vector<4x8xf32>
    %c0_30 = arith.constant 0 : index
    %c48 = arith.constant 48 : index
    %85 = vector.load %arg6[%c0_30, %c48] : memref<4x64xf32, #tpu.memory_space<vmem>>, vector<4x8xf32>
    tpu.vector_store %arg6[%c0_30, %c48], %84 {strides = array<i32>} : memref<4x64xf32, #tpu.memory_space<vmem>>, vector<4x8xf32>,
    %c0_31 = arith.constant 0 : index
    %c0_32 = arith.constant 0 : index
    %c224 = arith.constant 224 : index
    %86 = vector.load %arg2[%c0_31, %c0_32, %c224] : memref<1x4x256xf32, #tpu.memory_space<vmem>>, vector<1x4x32xf32>
    %87 = vector.shape_cast %86 : vector<1x4x32xf32> to vector<4x32xf32>
    %88 = vector.extract_strided_slice %87 {offsets = [0, 0], sizes = [4, 16], strides = [1, 1]} : vector<4x32xf32> to vector<4x16xf32>
    %89 = vector.extract_strided_slice %87 {offsets = [0, 16], sizes = [4, 16], strides = [1, 1]} : vector<4x32xf32> to vector<4x16xf32>
    %90 = arith.maximumf %88, %89 : vector<4x16xf32>
    %cst_33 = arith.constant dense<0.000000e+00> : vector<4x16xf32>
    %91 = tpu.matmul %90, %15, %cst_33 {dimension_numbers = #tpu.dot_dimension_numbers<[1], [0], [0], [1], [0, 0, 1, 1], [], []>} : vector<4x16xf32>, vector<16x16xf32>, vector<4x16xf32> -> vector<4x16xf32>
    %92 = vector.extract_strided_slice %91 {offsets = [0, 0], sizes = [4, 8], strides = [1, 1]} : vector<4x16xf32> to vector<4x8xf32>
    %93 = vector.extract_strided_slice %91 {offsets = [0, 8], sizes = [4, 8], strides = [1, 1]} : vector<4x16xf32> to vector<4x8xf32>
    %94 = arith.maximumf %92, %93 : vector<4x8xf32>
    %c0_34 = arith.constant 0 : index
    %c56 = arith.constant 56 : index
    %95 = vector.load %arg6[%c0_34, %c56] : memref<4x64xf32, #tpu.memory_space<vmem>>, vector<4x8xf32>
    tpu.vector_store %arg6[%c0_34, %c56], %94 {strides = array<i32>} : memref<4x64xf32, #tpu.memory_space<vmem>>, vector<4x8xf32>,
    %c0_35 = arith.constant 0 : index
    %c0_36 = arith.constant 0 : index
    %96 = vector.load %arg3[%c0_35, %c0_36] : memref<8x4xf32, #tpu.memory_space<vmem>>, vector<8x4xf32>
    %c0_37 = arith.constant 0 : index
    %c0_38 = arith.constant 0 : index
    %97 = vector.load %arg6[%c0_37, %c0_38] : memref<4x64xf32, #tpu.memory_space<vmem>>, vector<4x64xf32>
    %cst_39 = arith.constant dense<0.000000e+00> : vector<8x64xf32>
    %98 = tpu.matmul %96, %97, %cst_39 {dimension_numbers = #tpu.dot_dimension_numbers<[1], [0], [0], [1], [0, 0, 1, 1], [], []>} : vector<8x4xf32>, vector<4x64xf32>, vector<8x64xf32> -> vector<8x64xf32>
    %c0_40 = arith.constant 0 : index
    %c0_41 = arith.constant 0 : index
    %99 = vector.load %arg4[%c0_40, %c0_41] : memref<8x1xf32, #tpu.memory_space<vmem>>, vector<8x1xf32>
    %100 = vector.broadcast %99 : vector<8x1xf32> to vector<8x64xf32>
    %101 = arith.addf %98, %100 : vector<8x64xf32>
    %cst_42 = arith.constant 0.000000e+00 : f32
    %102 = vector.broadcast %cst_42 : f32 to vector<8x64xf32>
    %103 = arith.maximumf %101, %102 : vector<8x64xf32>
    %c0_43 = arith.constant 0 : index
    %c0_44 = arith.constant 0 : index
    %c0_45 = arith.constant 0 : index
    %104 = vector.load %arg5[%c0_43, %c0_44, %c0_45] : memref<1x8x64xf32, #tpu.memory_space<vmem>>, vector<1x8x64xf32>
    %105 = vector.shape_cast %104 : vector<1x8x64xf32> to vector<8x64xf32>
    %106 = vector.shape_cast %103 : vector<8x64xf32> to vector<1x8x64xf32>
    tpu.vector_store %arg5[%c0_43, %c0_44, %c0_45], %106 {strides = array<i32>} : memref<1x8x64xf32, #tpu.memory_space<vmem>>, vector<1x8x64xf32>,
    return
  }
  func.func @transform_0(%arg0: i32, %arg1: i32) -> (i32, i32, i32) {
    %c0_i32 = arith.constant 0 : i32
    %c0_i32_0 = arith.constant 0 : i32
    return %arg0, %c0_i32, %arg1 : i32, i32, i32
  }
  func.func @transform_1(%arg0: i32, %arg1: i32) -> (i32, i32) {
    %c0_i32 = arith.constant 0 : i32
    %c0_i32_0 = arith.constant 0 : i32
    %c0_i32_1 = arith.constant 0 : i32
    return %c0_i32, %c0_i32_0 : i32, i32
  }
  func.func @transform_2(%arg0: i32, %arg1: i32) -> (i32, i32) {
    %c0_i32 = arith.constant 0 : i32
    %c0_i32_0 = arith.constant 0 : i32
    %c0_i32_1 = arith.constant 0 : i32
    return %c0_i32, %c0_i32_0 : i32, i32
  }
  func.func @transform_3(%arg0: i32, %arg1: i32) -> (i32, i32, i32) {
    %c0_i32 = arith.constant 0 : i32
    %c0_i32_0 = arith.constant 0 : i32
    return %arg0, %c0_i32, %arg1 : i32, i32, i32
  }
}

</mosaic_0001>

<bundles_post_ra>
// kernel: tpu_custom_call.1
= control target key start
LH: loop header
LB: loop body
LE: loop exit
PB: predicated region body
PF: predicated region fallthrough
CT: control target
= control target key end

     0   :  { %8 = vsyncpa [#allocation4], 0  ;;  %s1092_s0 = inlined_call_operand.vmem [shape: f32[2,4,256], index: 0, kind: input, shape index: {}]   ;;  %s1093_s1 = inlined_call_operand.vmem [shape: f32[8,4], index: 1, kind: input, shape index: {}]   ;;  %s1094_s2 = inlined_call_operand.vmem [shape: f32[8,1], index: 2, kind: input, shape index: {}]   ;;  %s1095_s3 = inlined_call_operand.hbm [shape: f32[2,8,64], index: 3, kind: output, shape index: {}]  }
   0x1   :  { %10 = vsyncpa [#allocation4 + $0x1], 0  ;;  %s912_s12 = smov 0   ;;  %s914_s13 = smov 0  }
   0x2   :  { %s916_s14 = smov 0   ;;  %s918_s15 = smov 0  }
   0x3   :  { %s920_s16 = smov 0   ;;  %s922_s17 = smov 0  }
   0x4 LB: > { %s687_s18 = sadd.s32 4294967295, %s877_s17   ;;  %s688_s19 = sadd.s32 4294967294, %s877_s17   ;;  %s877_s17 = sphi %s922_s17, %s16_s17   ;;  %s873_s16 = sphi %s920_s16, %s1106_s16   ;;  %s869_s15 = sphi %s918_s15, %s1105_s15   ;;  %s865_s14 = sphi %s916_s14, %s1104_s14   ;;  %s861_s13 = sphi %s914_s13, %s1103_s13   ;;  %s857_s12 = sphi %s912_s12, %s1102_s12  }
   0x5   : > { %s28_s20 = sadd.s32 1, %s873_s16  ;;  %s107_s21 = sadd.s32 1, %s865_s14 }
   0x6   : > { %p30_p0 = scmp.ge.s32.totalorder %s28_s20, 2  ;;  %p117_p1 = scmp.ne.s32.totalorder %s865_s14, %s861_s13 }
   0x7   : > { %p118_p2 = scmp.eq.s32.totalorder %s687_s18, 1  ;;  %p123_p3 = scmp.ne.s32.totalorder %s861_s13, %s857_s12 }
   0x8   : > { %s1108_s20 = smov (%p30_p0, %s28_s20), 0  ;;  %p124_p5 = scmp.eq.s32.totalorder %s688_s19, 1 }
   0x9   : > { %p952_p4 = por %p118_p2, %p117_p1  ;;  %s102_s23 = ssub.s32 %s873_s16, %s1108_s20 }
   0xa   : > { %p691_p6 = scmp.ge.s32.totalorder %s877_s17, 1  ;;  %p105_p7 = scmp.eq.s32.totalorder %s102_s23, 0 }
   0xb   : > { %p959_p8 = por %p124_p5, %p123_p3  ;;  %p161_p9 = scmp.lt.s32.totalorder %s877_s17, 3 }
   0xc   : > { %s965_s25 = scalar_select %p105_p7, %s865_s14, %s107_s21  }
   0xd   : > { %p162_p10 = pnand %p691_p6, %p161_p9 }
   0xe   : > { %p190_p11 = scmp.lt.s32.totalorder (!%p162_p10), %s869_s15, 1  ;;  %s879_s4 = smov (!%p162_p10), 112  }
   0xf   : > { %165 = sbr.rel (%p162_p10) target bundleno = 804 (0x324), region = 32  ;;  %s880_s5 = smov (!%p162_p10), 64  }
  0x10   : > { %s881_s6 = smov (!%p162_p10), 96   ;;  %s882_s7 = smov (!%p162_p10), 32  }
  0x11   : > { %s884_s8 = smov (!%p162_p10), 120   ;;  %s885_s9 = smov (!%p162_p10), 8  }
  0x12   : > { %s886_s10 = smov (!%p162_p10), 16   ;;  %s887_s11 = smov (!%p162_p10), 56  }
  0x13   : > { %s888_s18 = smov (!%p162_p10), 24   ;;  %s889_s19 = smov (!%p162_p10), 48  }
  0x14   : > { %s191_s26 = scalar_select %p190_p11, %s869_s15, 1  ;;  %v199_v15 = vlaneseq  ;;  %v883_v31 = vmov 1.0   ;;  %vm222_vm3 = vcmask 130048   ;;  %vm251_vm4 = vcmask 60416  }
  0x15   : > { %s890_s21 = smov 40   ;;  %vm295_vm5 = vcmask 126016   ;;  %vm339_vm6 = vcmask 191616   ;;  %vm383_vm7 = vcmask 257216   ;;  %vm423_vm8 = vcmask 322816   ;;  %s186_s29 = sand.u32 1, %s861_s13  }
  0x16   : > { %s728_s27 = sshll.u32 %s191_s26, 3  ;;  %v203_v17 = vand.u32 127, %v199_v15  ;;  %v200_v18 = vshrl.u32 %v199_v15, 7  ;;  %vm467_vm9 = vcmask 388416   ;;  %vm511_vm10 = vcmask 454016   ;;  %s819_s23 = scalar_lea.hbm %s1095_s3, 16 }
  0x17   : > { %s972_s30 = scalar_lea.vmem %s1092_s0, %s728_s27  ;;  %vm555_vm11 = vcmask 519616   ;;  %vm569_vm12 = vcmask 1043456   ;;  %vm565_vm13 = vcmask 31744   ;;  %vm594_vm14 = vcmask 523264  }
  0x18   : > { %v253_v0 = vld [vmem:[%s972_s30] sm:$0xf]  ;;  %v469_v2 = vld [vmem:[%s972_s30 + $0x4] sm:$0xf]  ;;  %v695_v20 = vadd.s32 4294967288, %v203_v17  ;;  %v205_v21 = vmul.u32 2, %v203_v17 }
  0x19   : > { %v341_v1 = vld [vmem:[%s972_s30] sm:$0xf]  ;;  %255 = vrot.lane.b32.xlu0 %v253_v0, %s879_s4  ;;  %471 = vrot.lane.b32.xlu2 %v469_v2, %s879_s4  ;;  %v425_v4 = vld [vmem:[%s972_s30 + $0x4] sm:$0xf]  ;;  %v201_v24 = vadd.s32 8, %v200_v18  ;;  %vm204_vm0 = vcmp.lt.s32.totalorder %v203_v17, 8 }
  0x1a   : > { %343 = vrot.lane.b32.xlu1 %v341_v1, %s879_s4  ;;  %v297_v3 = vld [vmem:[%s972_s30] sm:$0xf]  ;;  %v983_v5 = vld [vmem:[%s972_s30 + $0x4] sm:$0xf]  ;;  %v207_v22 = vmul.u32 2, %v695_v20 }
  0x1b   : > { %v216_v14 = vld [vmem:[%s972_s30] sm:$0xf]  ;;  %v385_v32 = vld [vmem:[%s972_s30 + $0x4] sm:$0xf]  ;;  %s692_s30 = sshll.u32 %s186_s29, 3 }
  0x1c   : > { %v208_v25 = vadd.s32 1, %v207_v22  ;;  %v557_v17 = vld [vmem:[%s1093_s1] sm:$0xff] }
  0x1e   : > { %v209_v27 = vsel %vm204_vm0, %v205_v21, %v208_v25 }
  0x1f   : > { %vm994_vm1 = vcmp.eq.s32.totalorder %v201_v24, %v209_v27  ;;  %vm998_vm2 = vcmp.eq.s32.totalorder %v200_v18, %v209_v27 }
  0x20   : > { %704 = vmatpush.msk.msra.mxu2 %vm994_vm1, %v883_v31  ;;  %701 = vmatpush.msk.msra.mxu1 %vm994_vm1, %v883_v31 }
  0x21   : > { %299 = vrot.lane.b32.xlu0 %v297_v3, %s879_s4  ;;  %515 = vrot.lane.b32.xlu2 %v983_v5, %s879_s4 }
  0x22   : > { %427 = vrot.lane.b32.xlu1 %v425_v4, %s879_s4  ;;  %707 = vmatpush.msk.msra.mxu3 %vm994_vm1, %v883_v31 }
  0x23   : > { %698 = vmatpush.msk.msra.mxu0 %vm994_vm1, %v883_v31  ;;  %705 = vmatpush.msk.msra.mxu2 %vm998_vm2, %v883_v31 }
  0x24   : > { %702 = vmatpush.msk.msra.mxu1 %vm998_vm2, %v883_v31  ;;  %708 = vmatpush.msk.msra.mxu3 %vm998_vm2, %v883_v31 }
  0x25   : > { %699 = vmatpush.msk.msra.mxu0 %vm998_vm2, %v883_v31  ;;  %716 = vmatpush.msk.msrb.mxu2 %vm994_vm1, %v883_v31 }
  0x26   : > { %719 = vmatpush.msk.msrb.mxu3 %vm994_vm1, %v883_v31  ;;  %713 = vmatpush.msk.msrb.mxu1 %vm994_vm1, %v883_v31 }
  0x27   : > { %710 = vmatpush.msk.msrb.mxu0 %vm994_vm1, %v883_v31  ;;  %717 = vmatpush.msk.msrb.mxu2 %vm998_vm2, %v883_v31 }
  0x28   : > { %720 = vmatpush.msk.msrb.mxu3 %vm998_vm2, %v883_v31  ;;  %714 = vmatpush.msk.msrb.mxu1 %vm998_vm2, %v883_v31 }
  0x29   : > { %218 = vrot.lane.b32.xlu2 %v216_v14, %s879_s4  ;;  %711 = vmatpush.msk.msrb.mxu0 %vm998_vm2, %v883_v31 }
  0x73   : > { %v472_v26 = vpop.permute.xlu2 %471 }
  0x74   : > { %v474_v30 = vmax.f32 %v469_v2, %v472_v26 }
  0x7b   : > { %v516_v34 = vpop.permute.xlu2 %515 }
  0x7c   : > { %v518_v35 = vmax.f32 %v983_v5, %v516_v34 }
  0x83   : > { %v219_v38 = vpop.permute.xlu2 %218 }
  0x84   : > { %v221_v39 = vmax.f32 %v216_v14, %v219_v38 }
  0x86   : > { %700 = vmatmul.msk.f32.vlgmr.msra.gmra.mxu0 %vm222_vm3, %v221_v39 }
  0x8b   : > { %v256_v6 = vpop.permute.xlu0 %255 }
  0x8c   : > { %v258_v7 = vmax.f32 %v253_v0, %v256_v6  ;;  %v344_v11 = vpop.permute.xlu1 %343 }
  0x8d   : > { %v346_v12 = vmax.f32 %v341_v1, %v344_v11  ;;  %v559_v11 = vld [vmem:[%s1094_s2] sm:$0xff] }
  0x8e   : > { %260 = vst [vmem:[#allocation1] ss:$2 sm:$0xff] %v258_v7 }
  0x93   : > { %v300_v8 = vpop.permute.xlu0 %299 }
  0x94   : > { %v302_v9 = vmax.f32 %v297_v3, %v300_v8  ;;  %v428_v16 = vpop.permute.xlu1 %427 }
  0x95   : > { %v261_v10 = vld.sshfl [vmem:[#allocation1] sm:$0xff pattern:$0x75316420]  ;;  %v430_v19 = vmax.f32 %v425_v4, %v428_v16 }
  0x96   : > { %304 = vst [vmem:[#allocation1] ss:$2 sm:$0xff] %v302_v9 }
  0x9d   : > { %v305_v13 = vld.sshfl [vmem:[#allocation1] sm:$0xff pattern:$0x75316420] }
  0x9e   : > { %306 = vrot.lane.b32.xlu0 %v305_v13, %s880_s5  ;;  %348 = vst [vmem:[#allocation1] ss:$2 sm:$0xff] %v346_v12  ;;  %v891_v12 = vmov 0  }
  0x9f   : > { %797 = vset.pattern.permute.xlu2 %v891_v12  ;;  %798 = vset.pattern.permute.xlu0 %v891_v12 }
  0xa5   : > { %v349_v23 = vld.sshfl [vmem:[#allocation1] sm:$0xff pattern:$0x75316420] }
  0xa6   : > { %262 = vrot.lane.b32.xlu0 %v261_v10, %s881_s6  ;;  %350 = vrot.lane.b32.xlu1 %v349_v23, %s882_s7  ;;  %432 = vst [vmem:[#allocation1] ss:$2 sm:$0xff] %v430_v19 }
  0xad   : > { %v433_v33 = vld.sshfl [vmem:[#allocation1] sm:$0xff pattern:$0x75316420] }
  0xae   : > { %476 = vst [vmem:[#allocation1] ss:$2 sm:$0xff] %v474_v30  ;;  %387 = vrot.lane.b32.xlu0 %v385_v32, %s879_s4  ;;  %s725_s4 = sshll.u32 %s869_s15, 3 }
  0xb5   : > { %v477_v36 = vld.sshfl [vmem:[#allocation1] sm:$0xff pattern:$0x75316420] }
  0xb6   : > { %478 = vrot.lane.b32.xlu1 %v477_v36, %s880_s5  ;;  %520 = vst [vmem:[#allocation1] ss:$2 sm:$0xff] %v518_v35 }
  0xbd   : > { %v521_v37 = vld.sshfl [vmem:[#allocation1] sm:$0xff pattern:$0x75316420] }
  0xbe   : > { %434 = vrot.lane.b32.xlu1 %v433_v33, %s881_s6  ;;  %522 = vrot.lane.b32.xlu2 %v521_v37, %s882_s7 }
 0x103   : > { %v243_v49 = vpop.f32.mrf.mxu0 }
 0x110   : > { %v307_v40 = vpop.permute.xlu0 %306 }
 0x111   : > { %706 = vmatmul.msk.f32.vlgmr.msra.gmra.mxu2 %vm222_vm3, %v307_v40 }
 0x118   : > { %v263_v41 = vpop.permute.xlu0 %262  ;;  %v351_v42 = vpop.permute.xlu1 %350 }
 0x119   : > { %703 = vmatmul.msk.f32.vlgmr.msra.gmra.mxu1 %vm222_vm3, %v263_v41  ;;  %709 = vmatmul.msk.f32.vlgmr.msra.gmra.mxu3 %vm222_vm3, %v351_v42  ;;  %v523_v43 = vpop.permute.xlu2 %522 }
 0x120   : > { %v388_v44 = vpop.permute.xlu0 %387 }
 0x121   : > { %v390_v45 = vmax.f32 %v385_v32, %v388_v44  ;;  %721 = vmatmul.msk.f32.vlgmr.msrb.gmra.mxu3 %vm222_vm3, %v523_v43 }
 0x123   : > { %712 = vmatmul.msk.f32.vlgmr.msrb.gmra.mxu0 %vm222_vm3, %v390_v45 }
 0x128   : > { %v479_v46 = vpop.permute.xlu1 %478 }
 0x129   : > { %718 = vmatmul.msk.f32.vlgmr.msrb.gmra.mxu2 %vm222_vm3, %v479_v46 }
 0x130   : > { %v435_v47 = vpop.permute.xlu1 %434 }
 0x131   : > { %715 = vmatmul.msk.f32.vlgmr.msrb.gmra.mxu1 %vm222_vm3, %v435_v47 }
 0x194   : > { %v327_v48 = vpop.f32.mrf.mxu2 }
 0x195   : > { %331 = vrot.lane.b32.xlu0 %v327_v48, %s884_s8 }
 0x196   : > { %v283_v52 = vpop.f32.mrf.mxu1 }
 0x19c   : > { %v371_v50 = vpop.f32.mrf.mxu3 }
 0x19d   : > { %375 = vrot.lane.b32.xlu1 %v371_v50, %s884_s8 }
 0x1a0   : > { %v411_v51 = vpop.f32.mrf.mxu0 }
 0x1a1   : > { %415 = vrot.lane.b32.xlu2 %v411_v51, %s884_s8 }
 0x1a4   : > { %v543_v55 = vpop.f32.mrf.mxu3 }
 0x1a9   : > { %287 = vrot.lane.b32.xlu2 %v283_v52, %s884_s8 }
 0x1ac   : > { %v499_v53 = vpop.f32.mrf.mxu2 }
 0x1ad   : > { %503 = vrot.lane.b32.xlu1 %v499_v53, %s884_s8 }
 0x1ae   : > { %v455_v54 = vpop.f32.mrf.mxu1 }
 0x1af   : > { %459 = vrot.lane.b32.xlu0 %v455_v54, %s884_s8 }
 0x1b1   : > { %547 = vrot.lane.b32.xlu2 %v543_v55, %s884_s8 }
 0x1b7   : > { %247 = vrot.lane.b32.xlu0 %v243_v49, %s884_s8  ;;  %s188_s8 = scalar_lea.vmem [#allocation3], %s692_s30 }
 0x1fb   : > { %v416_v56 = vpop.permute.xlu2 %415 }
 0x1fc   : > { %v418_v57 = vmax.f32 %v411_v51, %v416_v56 }
 0x1fe   : > { %420 = vrot.lane.b32.xlu1 %v418_v57, %s882_s7  ;;  %s608_s7 = scalar_lea.hbm %s1095_s3, %s725_s4 }
 0x203   : > { %v288_v58 = vpop.permute.xlu2 %287 }
 0x204   : > { %v290_v59 = vmax.f32 %v283_v52, %v288_v58 }
 0x206   : > { %292 = vrot.lane.b32.xlu1 %v290_v59, %s885_s9  ;;  %s610_s9 = sshll.u32 %s188_s8, 4  ;;  %s611_s9 = int_to_ptr.vmem [resolvable:$true] %s610_s9 }
 0x207   : > { %v332_v60 = vpop.permute.xlu0 %331 }
 0x208   : > { %v334_v61 = vmax.f32 %v327_v48, %v332_v60 }
 0x20a   : > { %336 = vrot.lane.b32.xlu2 %v334_v61, %s886_s10  ;;  %s612_s10 = sshll.u32 %s608_s7, 4  ;;  %s613_s10 = int_to_ptr.hbm [resolvable:$true] %s612_s10 }
 0x20b   : > { %v548_v62 = vpop.permute.xlu2 %547 }
 0x20c   : > { %v550_v63 = vmax.f32 %v543_v55, %v548_v62 }
 0x20e   : > { %552 = vrot.lane.b32.xlu1 %v550_v63, %s887_s11  ;;  %s597_s11 = scalar_lea.sflag [#allocation4], %s186_s29 }
 0x20f   : > { %v376_v0 = vpop.permute.xlu1 %375 }
 0x210   : > { %v378_v1 = vmax.f32 %v371_v50, %v376_v0 }
 0x212   : > { %380 = vrot.lane.b32.xlu0 %v378_v1, %s888_s18  ;;  %s813_s18 = sshra.s32 %s613_s10, 4  ;;  %s814_s18 = int_to_ptr.hbm [resolvable:$true] %s813_s18 }
 0x213   : > { %s815_s15 = scalar_lea.hbm %s814_s18, 8  ;;  %p820_p1 = scmp.lt.s32.totalorder %s814_s18, %s1095_s3 }
 0x214   : > { %p816_p12 = scmp.ne.s32.totalorder %s814_s18, %s815_s15  ;;  %p821_p2 = scmp.lt.s32.totalorder %s819_s23, %s815_s15 }
 0x216   : > { %p817_p13 = pnand %p816_p12, %p952_p4  ;;  %p822_p3 = por %p821_p2, %p820_p1 }
 0x218   : > { %p818_p0 = pneg %p817_p13 }
 0x21a   : > { %p823_p5 = pnand %p822_p3, %p818_p0 }
 0x21f   : > { %v504_v2 = vpop.permute.xlu1 %503 }
 0x220   : > { %v506_v3 = vmax.f32 %v499_v53, %v504_v2 }
 0x221   : > { %v460_v4 = vpop.permute.xlu0 %459 }
 0x222   : > { %v462_v5 = vmax.f32 %v455_v54, %v460_v4  ;;  %508 = vrot.lane.b32.xlu0 %v506_v3, %s889_s19 }
 0x224   : > { %464 = vrot.lane.b32.xlu2 %v462_v5, %s890_s21 }
 0x229   : > { %v248_v6 = vpop.permute.xlu0 %247 }
 0x22a   : > { %v250_v7 = vmax.f32 %v243_v49, %v248_v6 }
 0x22c   : > { %252 = vst.msk [vmem:[#allocation2] sm:$0xf] %vm251_vm4, %v250_v7  ;;  %562 = vperm.xlu2 %797, %v559_v11  }
 0x264   : > { %v337_v10 = vpop.permute.xlu2 %336 }
 0x270   : > { %v421_v8 = vpop.permute.xlu1 %420 }
 0x278   : > { %v293_v9 = vpop.permute.xlu1 %292 }
 0x279   : > { %296 = vst.msk [vmem:[#allocation2] sm:$0xf] %vm295_vm5, %v293_v9 }
 0x27a   : > { %340 = vst.msk [vmem:[#allocation2] sm:$0xf] %vm339_vm6, %v337_v10 }
 0x27e   : > { %v465_v14 = vpop.permute.xlu2 %464 }
 0x280   : > { %v553_v16 = vpop.permute.xlu1 %552 }
 0x284   : > { %v381_v13 = vpop.permute.xlu0 %380 }
 0x285   : > { %384 = vst.msk [vmem:[#allocation2] sm:$0xf] %vm383_vm7, %v381_v13 }
 0x286   : > { %424 = vst.msk [vmem:[#allocation2] sm:$0xf] %vm423_vm8, %v421_v8  ;;  %v563_v19 = vpop.permute.xlu2 %562 }
 0x287   : > { %468 = vst.msk [vmem:[#allocation2] sm:$0xf] %vm467_vm9, %v465_v14 }
 0x294   : > { %v509_v15 = vpop.permute.xlu0 %508 }
 0x295   : > { %512 = vst.msk [vmem:[#allocation2] sm:$0xf] %vm511_vm10, %v509_v15 }
 0x296   : > { %556 = vst.msk [vmem:[#allocation2] sm:$0xf] %vm555_vm11, %v553_v16 }
 0x29d   : > { %v558_v18 = vld [vmem:[#allocation2] sm:$0xf] }
 0x29e   : > { %722 = vmatpush.msk.msra.mxu0 %vm569_vm12, %v558_v18 }
 0x29f   : > { %723 = vmatmul.msk.f32.vlgmr.msra.gmra.mxu0 %vm565_vm13, %v557_v17 }
 0x31c   : > { %v590_v20 = vpop.f32.mrf.mxu0 }
 0x31d   : > { %v591_v21 = vadd.f32 %v590_v20, %v563_v19 }
 0x31f   : > { %v593_v22 = vmax.f32 %v591_v21, 0.0 }
 0x321   : > { %595 = vst.msk [vmem:[%s188_s8] sm:$0xff] %vm594_vm14, %v593_v22 }
 0x322   : > { %826 = shalt.err (!%p823_p5)
}
 0x323   : > { %729 = dma.vmem_to_hbm [thread:$0]  (%p952_p4), %s611_s9, 128, %s613_s10, %s597_s11  }
 0x324 PF: > { %p735_p6 = scmp.ge.s32.totalorder %s877_s17, 2  ;;  %s624_s28 = sand.u32 1, %s857_s12  }
 0x325   : > { %s625_s29 = scalar_lea.sflag [#allocation4], %s624_s28 }
 0x326   : > { %p732_p7 = pnand %p735_p6, %p959_p8 }
 0x328   : > { %p733_p9 = pneg %p732_p7 }
 0x32a   : > { %852 = dma.done.wait (%p733_p9), %s625_s29, 128  }
 0x32b   : > { %854 = vsyncadd (%p733_p9), %s625_s29, 4294967168  ;;  %s16_s17 = sadd.s32 1, %s877_s17   ;;  %s1102_s12 = smov %s861_s13 }
 0x32c   : > { %p13_p10 = scmp.ge.s32.totalorder %s16_s17, 4   ;;  %s1103_s13 = smov %s865_s14 }
 0x32d   : > { %s1104_s14 = smov %s965_s25  ;;  %s1105_s15 = smov %s873_s16 }
 0x32e   : > { %s1106_s16 = smov %s1108_s20  ;;  %15 = sbr.rel (!%p13_p10) target bundleno = 4 (0x4), region = 67 }
 0x333   :  { %631 = vsyncpa [#allocation4], 1 }
 0x334   :  { %633 = vsyncpa [#allocation4 + $0x1], 1 }

</bundles_post_ra>
